<compile_context>
chip_gen: v6e
topology: v6e:2x2x1
jax: 0.10.0
libtpu: 0.0.40
codegen_flags: <defaults>
</compile_context>

<pallas_src>
import math

import jax
import jax.numpy as jnp
from jax.experimental import pallas as pl
from jax.experimental.pallas import tpu as pltpu

EMBED_DIM = 400  # matches the module's `embed_dim`


def head_kernel(x_ref, wqkv_ref, o_ref):
    # x_ref:    (B, T, C)          full input, resident in VMEM
    # wqkv_ref: (C, 3 * H_pad)     fused [Wq*scale | Wk | Wv], zero-padded to 128 lanes each
    # o_ref:    (B, T, H_pad)      lane-dense padded output
    B, T, C = x_ref.shape
    HP = o_ref.shape[-1]

    x2d = x_ref[...].reshape(B * T, C)                                   # (B*T, C)

    # Single fused projection matmul: one weight DMA, one MXU push sequence.
    qkv = jnp.dot(x2d, wqkv_ref[...], preferred_element_type=jnp.float32)  # (B*T, 3*HP)
    qkv = qkv.reshape(B, T, 3 * HP)

    # 128-aligned lane slices (no intra-vreg lane shuffles).
    q = qkv[:, :, 0:HP]            # scale already folded into Wq
    k = qkv[:, :, HP:2 * HP]
    v = qkv[:, :, 2 * HP:3 * HP]   # padded columns are exactly zero

    # scores = (q * scale) @ k^T   (padded head dims contribute 0)
    s = jnp.einsum("bqd,bkd->bqk", q, k, preferred_element_type=jnp.float32)  # (B, T, T)

    # Causal (lower-triangular) mask, built once for all batch elements.
    row = jax.lax.broadcasted_iota(jnp.int32, (T, T), 0)
    col = jax.lax.broadcasted_iota(jnp.int32, (T, T), 1)
    s = jnp.where((col <= row)[None, :, :], s, -1e30)   # large finite: NaN-safe

    # Numerically stable softmax; reciprocal on the EUP slot.
    s = s - jnp.max(s, axis=-1, keepdims=True)
    p = jnp.exp(s)
    denom = jnp.sum(p, axis=-1, keepdims=True)
    p = p * pl.reciprocal(denom, approx=True)

    out = jnp.einsum("bqk,bkd->bqd", p, v, preferred_element_type=jnp.float32)  # (B, T, HP)
    o_ref[...] = out.astype(o_ref.dtype)


def head_forward(x, wq, wk, wv):
    """x: (B, T, C) float32; wq/wk/wv: (C, H) float32 -> (B, T, H)."""
    B, T, C = x.shape
    H = wq.shape[1]
    scale = 1.0 / math.sqrt(H)

    # Pad head dim to a multiple of 128 lanes (MXU would lane-pad to 128 anyway;
    # doing it explicitly makes qkv, its slices and the output store lane-dense).
    HP = ((H + 127) // 128) * 128
    pad = HP - H

    def pad_w(w):
        return jnp.pad(w, ((0, 0), (0, pad)))

    # Fold the attention scale into Wq at trace time; fuse [Wq|Wk|Wv].
    wqkv = jnp.concatenate([pad_w(wq * scale), pad_w(wk), pad_w(wv)], axis=1)  # (C, 3*HP)

    out_padded = pl.pallas_call(
        head_kernel,
        out_shape=jax.ShapeDtypeStruct((B, T, HP), jnp.float32),
        grid_spec=pltpu.PrefetchScalarGridSpec(
            num_scalar_prefetch=0,
            grid=(1,),  # single step: whole problem fits VMEM trivially
            in_specs=[
                pl.BlockSpec((B, T, C), lambda i: (0, 0, 0)),
                pl.BlockSpec((C, 3 * HP), lambda i: (0, 0)),
            ],
            out_specs=pl.BlockSpec((B, T, HP), lambda i: (0, 0, 0)),
        ),
        compiler_params=pltpu.CompilerParams(
            dimension_semantics=("arbitrary",),
        ),
    )(x, wqkv)

    # TODO(synk): for T in the thousands, switch to a tq/tk-tiled online-softmax
    # (flash) structure instead of materializing the full (T, T) score matrix.
    return out_padded[:, :, :H]


def head_reference(x, wq, wk, wv):
    """Plain-JAX reference mirroring the PyTorch forward."""
    q = x @ wq
    k = x @ wk
    v = x @ wv
    s = (q @ jnp.swapaxes(k, -2, -1)) * (1.0 / math.sqrt(k.shape[-1]))
    T = x.shape[1]
    mask = jnp.tril(jnp.ones((T, T), dtype=bool))
    s = jnp.where(mask, s, -jnp.inf)
    p = jax.nn.softmax(s, axis=-1)
    return p @ v


if __name__ == "__main__":
    # Small shapes consistent with the module: B=2 batch, T=8 tokens,
    # C=embed_dim=400, head_size=64.
    B, T, C, H = 2, 8, EMBED_DIM, 64

    key = jax.random.PRNGKey(0)
    kx, kq, kk, kv = jax.random.split(key, 4)

    x = jax.random.normal(kx, (B, T, C), dtype=jnp.float32)

    # Deterministic "Linear(embed_dim, head_size, bias=False)" weights,
    # initialized like PyTorch (uniform in +-1/sqrt(fan_in)), stored as (C, H).
    bound = 1.0 / math.sqrt(C)
    wq = jax.random.uniform(kq, (C, H), jnp.float32, -bound, bound)
    wk = jax.random.uniform(kk, (C, H), jnp.float32, -bound, bound)
    wv = jax.random.uniform(kv, (C, H), jnp.float32, -bound, bound)

    out = head_forward(x, wq, wk, wv)
    out = jax.block_until_ready(out)

    ref = head_reference(x, wq, wk, wv)
    assert out.shape == (B, T, H)
    # Slightly looser tolerance than exact f32 due to the EUP approx reciprocal
    # in the softmax normalization (relative error ~1e-4).
    assert jnp.allclose(out, ref, atol=2e-3, rtol=2e-3), "mismatch vs reference"

    print("KERNEL_OK")
</pallas_src>

<mosaic_0001>
module attributes {stable_mosaic.version = 11 : i64} {
  func.func @head_kernel(%arg0: i32, %arg1: memref<2x8x400xf32, #tpu.memory_space<vmem>>, %arg2: memref<400x384xf32, #tpu.memory_space<vmem>>, %arg3: memref<2x8x128xf32, #tpu.memory_space<vmem>>) attributes {dimension_semantics = [#tpu.dimension_semantics<arbitrary>], iteration_bounds = array<i64: 1>, scalar_prefetch = 0 : i64, scratch_operands = 0 : i64, tpu.core_type = #tpu.core_type<tc>, window_params = [{pipeline_mode = #tpu.pipeline_mode<synchronous>, transform_indices = @transform_0, window_bounds = array<i64: 2, 8, 400>}, {pipeline_mode = #tpu.pipeline_mode<synchronous>, transform_indices = @transform_1, window_bounds = array<i64: 400, 384>}, {pipeline_mode = #tpu.pipeline_mode<synchronous>, transform_indices = @transform_2, window_bounds = array<i64: 2, 8, 128>}]} {
    %c0 = arith.constant 0 : index
    %c0_0 = arith.constant 0 : index
    %c0_1 = arith.constant 0 : index
    %0 = vector.load %arg1[%c0, %c0_0, %c0_1] : memref<2x8x400xf32, #tpu.memory_space<vmem>>, vector<2x8x400xf32>
    %1 = vector.shape_cast %0 : vector<2x8x400xf32> to vector<16x400xf32>
    %c0_2 = arith.constant 0 : index
    %c0_3 = arith.constant 0 : index
    %2 = vector.load %arg2[%c0_2, %c0_3] : memref<400x384xf32, #tpu.memory_space<vmem>>, vector<400x384xf32>
    %cst = arith.constant dense<0.000000e+00> : vector<16x384xf32>
    %3 = tpu.matmul %1, %2, %cst {dimension_numbers = #tpu.dot_dimension_numbers<[1], [0], [0], [1], [0, 0, 1, 1], [], []>} : vector<16x400xf32>, vector<400x384xf32>, vector<16x384xf32> -> vector<16x384xf32>
    %4 = vector.shape_cast %3 : vector<16x384xf32> to vector<2x8x384xf32>
    %5 = vector.extract_strided_slice %4 {offsets = [0, 0, 0], sizes = [2, 8, 128], strides = [1, 1, 1]} : vector<2x8x384xf32> to vector<2x8x128xf32>
    %6 = vector.extract_strided_slice %4 {offsets = [0, 0, 128], sizes = [2, 8, 128], strides = [1, 1, 1]} : vector<2x8x384xf32> to vector<2x8x128xf32>
    %7 = vector.extract_strided_slice %4 {offsets = [0, 0, 256], sizes = [2, 8, 128], strides = [1, 1, 1]} : vector<2x8x384xf32> to vector<2x8x128xf32>
    "tpu.trace_start"() <{level = 10 : i32, message = "bqd,bkd->bqk"}> : () -> ()
    %cst_4 = arith.constant dense<0.000000e+00> : vector<2x8x8xf32>
    %8 = tpu.matmul %5, %6, %cst_4 {dimension_numbers = #tpu.dot_dimension_numbers<[2], [2], [1], [1], [0, 0, 0, 1, 1, 1], [0], [0]>} : vector<2x8x128xf32>, vector<2x8x128xf32>, vector<2x8x8xf32> -> vector<2x8x8xf32>
    "tpu.trace_stop"() : () -> ()
    %9 = tpu.iota {dimensions = array<i32: 0>} : vector<8x8xi32>
    %10 = tpu.iota {dimensions = array<i32: 1>} : vector<8x8xi32>
    %11 = arith.cmpi sle, %10, %9 : vector<8x8xi32>
    %12 = vector.shape_cast %11 : vector<8x8xi1> to vector<1x8x8xi1>
    %cst_5 = arith.constant -1.000000e+30 : f32
    %13 = vector.shape_cast %12 : vector<1x8x8xi1> to vector<1x8x8xi1>
    %14 = vector.broadcast %13 : vector<1x8x8xi1> to vector<2x8x8xi1>
    %15 = vector.broadcast %cst_5 : f32 to vector<2x8x8xf32>
    %16 = arith.select %14, %8, %15 : vector<2x8x8xi1>, vector<2x8x8xf32>
    %cst_6 = arith.constant dense<0xFF800000> : vector<2x8xf32>
    %17 = vector.multi_reduction <maximumf>, %16, %cst_6 [2] : vector<2x8x8xf32> to vector<2x8xf32>
    %18 = vector.shape_cast %17 : vector<2x8xf32> to vector<2x8x1xf32>
    %19 = vector.broadcast %18 : vector<2x8x1xf32> to vector<2x8x8xf32>
    %20 = arith.subf %16, %19 : vector<2x8x8xf32>
    %21 = math.exp %20 : vector<2x8x8xf32>
    %cst_7 = arith.constant dense<0.000000e+00> : vector<2x8xf32>
    %22 = vector.multi_reduction <add>, %21, %cst_7 [2] : vector<2x8x8xf32> to vector<2x8xf32>
    %23 = vector.shape_cast %22 : vector<2x8xf32> to vector<2x8x1xf32>
    %24 = tpu.reciprocal %23 {approx = true} : vector<2x8x1xf32> -> vector<2x8x1xf32>
    %25 = vector.broadcast %24 : vector<2x8x1xf32> to vector<2x8x8xf32>
    %26 = arith.mulf %21, %25 : vector<2x8x8xf32>
    "tpu.trace_start"() <{level = 10 : i32, message = "bqk,bkd->bqd"}> : () -> ()
    %cst_8 = arith.constant dense<0.000000e+00> : vector<2x8x128xf32>
    %27 = tpu.matmul %26, %7, %cst_8 {dimension_numbers = #tpu.dot_dimension_numbers<[2], [1], [1], [2], [0, 0, 0, 1, 1, 2], [0], [0]>} : vector<2x8x8xf32>, vector<2x8x128xf32>, vector<2x8x128xf32> -> vector<2x8x128xf32>
    "tpu.trace_stop"() : () -> ()
    %c0_9 = arith.constant 0 : index
    %c0_10 = arith.constant 0 : index
    %c0_11 = arith.constant 0 : index
    %28 = vector.load %arg3[%c0_9, %c0_10, %c0_11] : memref<2x8x128xf32, #tpu.memory_space<vmem>>, vector<2x8x128xf32>
    tpu.vector_store %arg3[%c0_9, %c0_10, %c0_11], %27 {strides = array<i32>} : memref<2x8x128xf32, #tpu.memory_space<vmem>>, vector<2x8x128xf32>,
    return
  }
  func.func @transform_0(%arg0: i32) -> (i32, i32, i32) {
    %c0_i32 = arith.constant 0 : i32
    %c0_i32_0 = arith.constant 0 : i32
    %c0_i32_1 = arith.constant 0 : i32
    %c0_i32_2 = arith.constant 0 : i32
    return %c0_i32, %c0_i32_0, %c0_i32_1 : i32, i32, i32
  }
  func.func @transform_1(%arg0: i32) -> (i32, i32) {
    %c0_i32 = arith.constant 0 : i32
    %c0_i32_0 = arith.constant 0 : i32
    %c0_i32_1 = arith.constant 0 : i32
    return %c0_i32, %c0_i32_0 : i32, i32
  }
  func.func @transform_2(%arg0: i32) -> (i32, i32, i32) {
    %c0_i32 = arith.constant 0 : i32
    %c0_i32_0 = arith.constant 0 : i32
    %c0_i32_1 = arith.constant 0 : i32
    %c0_i32_2 = arith.constant 0 : i32
    return %c0_i32, %c0_i32_0, %c0_i32_1 : i32, i32, i32
  }
}

</mosaic_0001>

<bundles_post_ra>
// kernel: tpu_custom_call.1
= control target key start
LH: loop header
LB: loop body
LE: loop exit
PB: predicated region body
PF: predicated region fallthrough
CT: control target
= control target key end

     0   :  { %7 = vsyncpa [#allocation3], 0  ;;  %s1111_s0 = inlined_call_operand.hbm [shape: f32[2,8,400], index: 0, kind: input, shape index: {}]   ;;  %s1112_s1 = inlined_call_operand.hbm [shape: f32[400,384], index: 1, kind: input, shape index: {}]   ;;  %s1113_s2 = inlined_call_operand.hbm [shape: f32[2,8,128], index: 2, kind: output, shape index: {}]  }
   0x1   :  { %8 = vsyncpa [#allocation6], 0 }
   0x2   :  { %9 = vsyncpa [#allocation4], 0  ;;  %s1004_s9 = smov [#allocation2]  }
   0x3   :  { %s15_s10 = sshll.u32 %s1004_s9, 4  ;;  %s16_s10 = int_to_ptr.vmem [resolvable:$true] %s15_s10 }
   0x4   :  { %s946_s11 = scalar_lea.vmem %s16_s10, 1024  ;;  %p951_p1 = scmp.lt.s32.totalorder %s16_s10, %s16_s10 }
   0x5   :  { %p947_p0 = scmp.ne.s32.totalorder %s16_s10, %s946_s11  ;;  %p952_p2 = scmp.lt.s32.totalorder %s946_s11, %s946_s11 }
   0x7   :  { %p953_p3 = por %p952_p2, %p951_p1 }
   0x9   :  { %p954_p4 = pnand %p953_p3, %p947_p0 }
   0xb   :  { %957 = shalt.err (!%p954_p4)
}
   0xc   :  { %s1005_s12 = smov 512   ;;  %s1006_s13 = smov 32  }
   0xd   :  { %21 = dma.hbm_to_vmem [thread:$0]  %s1111_s0, 1024, %s16_s10, [#allocation3], %s1005_s12, %s1005_s12, %s1006_s13  }
   0xe   :  { %s1007_s16 = smov [#allocation5]  }
   0xf   :  { %s27_s17 = sshll.u32 %s1007_s16, 4  ;;  %s28_s17 = int_to_ptr.vmem [resolvable:$true] %s27_s17 }
  0x10   :  { %s966_s18 = scalar_lea.vmem %s28_s17, 19200  ;;  %p971_p6 = scmp.lt.s32.totalorder %s28_s17, %s28_s17 }
  0x11   :  { %p967_p5 = scmp.ne.s32.totalorder %s28_s17, %s966_s18  ;;  %p972_p7 = scmp.lt.s32.totalorder %s966_s18, %s966_s18 }
  0x13   :  { %p973_p8 = por %p972_p7, %p971_p6 }
  0x15   :  { %p974_p9 = pnand %p973_p8, %p967_p5 }
  0x17   :  { %977 = shalt.err (!%p974_p9)
}
  0x18   :  { %s1008_s19 = smov 384   ;;  %s1009_s20 = smov 24  }
  0x19   :  { %33 = dma.hbm_to_vmem [thread:$0]  %s1112_s1, 19200, %s28_s17, [#allocation6], %s1008_s19, %s1008_s19, %s1009_s20  }
  0x1a   :  { %998 = dma.done.wait [#allocation3], 1024  }
  0x1b   :  { %999 = vsyncadd [#allocation3], 4294966272 }
  0x1c   :  { %1000 = dma.done.wait [#allocation6], 19200  }
  0x1d   :  { %1001 = vsyncadd [#allocation6], 4294948096  ;;  %v94_v0 = vld [vmem:[#allocation5 + $0x170] sm:$0xff]  ;;  %v93_v1 = vld [vmem:[#allocation5 + $0x168] sm:$0xff]  ;;  %vm198_vm0 = vcmask 130048   ;;  %vm1011_vm1 = vmmov 0  }
  0x1e   :  { %v91_v2 = vld [vmem:[#allocation5 + $0x158] sm:$0xff]  ;;  %205 = vmatprep.subr.mxu0 %v94_v0  ;;  %v90_v3 = vld [vmem:[#allocation5 + $0x150] sm:$0xff]  ;;  %v88_v4 = vld [vmem:[#allocation5 + $0x140] sm:$0xff]  ;;  %vm658_vm3 = vcmask 64512   ;;  %s1012_s0 = smov [#allocation7]  }
  0x1f   :  { %206 = vmatpush1.msra.mxu0 %v93_v1  ;;  %v87_v5 = vld [vmem:[#allocation5 + $0x138] sm:$0xff]  ;;  %v85_v6 = vld [vmem:[#allocation5 + $0x128] sm:$0xff]  ;;  %v84_v7 = vld [vmem:[#allocation5 + $0x120] sm:$0xff]  ;;  %s834_s1 = sshll.u32 %s1012_s0, 4  ;;  %s835_s1 = int_to_ptr.vmem [resolvable:$true] %s834_s1 }
  0x20   :  { %207 = vmatprep.subr.mxu0 %v91_v2  ;;  %v82_v8 = vld [vmem:[#allocation5 + $0x110] sm:$0xff]  ;;  %v81_v9 = vld [vmem:[#allocation5 + $0x108] sm:$0xff]  ;;  %v79_v10 = vld [vmem:[#allocation5 + $0xf8] sm:$0xff]  ;;  %s978_s23 = scalar_lea.vmem %s835_s1, 256  ;;  %p983_p11 = scmp.lt.s32.totalorder %s835_s1, %s835_s1 }
  0x21   :  { %208 = vmatpush1.msra.mxu0 %v90_v3  ;;  %v78_v11 = vld [vmem:[#allocation5 + $0xf0] sm:$0xff]  ;;  %v189_v13 = vld [vmem:[#allocation5 + $0x468] sm:$0xff]  ;;  %v76_v14 = vld [vmem:[#allocation5 + $0xe0] sm:$0xff]  ;;  %p979_p10 = scmp.ne.s32.totalorder %s835_s1, %s978_s23  ;;  %p984_p12 = scmp.lt.s32.totalorder %s978_s23, %s978_s23 }
  0x22   :  { %209 = vmatprep.subr.mxu0 %v88_v4  ;;  %v190_v12 = vld [vmem:[#allocation5 + $0x470] sm:$0xff]  ;;  %v187_v15 = vld [vmem:[#allocation5 + $0x458] sm:$0xff]  ;;  %v184_v18 = vld [vmem:[#allocation5 + $0x440] sm:$0xff] }
  0x23   :  { %210 = vmatpush1.msra.mxu0 %v87_v5  ;;  %282 = vmatprep.subr.mxu1 %v190_v12  ;;  %v75_v16 = vld [vmem:[#allocation5 + $0xd8] sm:$0xff]  ;;  %v186_v17 = vld [vmem:[#allocation5 + $0x450] sm:$0xff]  ;;  %v73_v19 = vld [vmem:[#allocation5 + $0xc8] sm:$0xff]  ;;  %p985_p13 = por %p984_p12, %p983_p11 }
  0x24   :  { %211 = vmatprep.subr.mxu0 %v85_v6  ;;  %283 = vmatpush1.msra.mxu1 %v189_v13  ;;  %v183_v20 = vld [vmem:[#allocation5 + $0x438] sm:$0xff]  ;;  %v72_v21 = vld [vmem:[#allocation5 + $0xc0] sm:$0xff]  ;;  %v181_v22 = vld [vmem:[#allocation5 + $0x428] sm:$0xff] }
  0x25   :  { %212 = vmatpush1.msra.mxu0 %v84_v7  ;;  %284 = vmatprep.subr.mxu1 %v187_v15  ;;  %v70_v23 = vld [vmem:[#allocation5 + $0xb0] sm:$0xff]  ;;  %v180_v24 = vld [vmem:[#allocation5 + $0x420] sm:$0xff]  ;;  %v69_v25 = vld [vmem:[#allocation5 + $0xa8] sm:$0xff]  ;;  %p986_p0 = pnand %p985_p13, %p979_p10 }
  0x26   :  { %213 = vmatprep.subr.mxu0 %v82_v8  ;;  %285 = vmatpush1.msra.mxu1 %v186_v17  ;;  %v178_v26 = vld [vmem:[#allocation5 + $0x410] sm:$0xff]  ;;  %v67_v27 = vld [vmem:[#allocation5 + $0x98] sm:$0xff]  ;;  %v177_v28 = vld [vmem:[#allocation5 + $0x408] sm:$0xff] }
  0x27   :  { %214 = vmatpush1.msra.mxu0 %v81_v9  ;;  %286 = vmatprep.subr.mxu1 %v184_v18  ;;  %v66_v29 = vld [vmem:[#allocation5 + $0x90] sm:$0xff]  ;;  %v175_v30 = vld [vmem:[#allocation5 + $0x3f8] sm:$0xff]  ;;  %v64_v31 = vld [vmem:[#allocation5 + $0x80] sm:$0xff] }
  0x28   :  { %215 = vmatprep.subr.mxu0 %v79_v10  ;;  %287 = vmatpush1.msra.mxu1 %v183_v20  ;;  %v174_v32 = vld [vmem:[#allocation5 + $0x3f0] sm:$0xff]  ;;  %v63_v33 = vld [vmem:[#allocation5 + $0x78] sm:$0xff]  ;;  %v172_v34 = vld [vmem:[#allocation5 + $0x3e0] sm:$0xff] }
  0x29   :  { %216 = vmatpush1.msra.mxu0 %v78_v11  ;;  %288 = vmatprep.subr.mxu1 %v181_v22  ;;  %v61_v35 = vld [vmem:[#allocation5 + $0x68] sm:$0xff]  ;;  %v171_v36 = vld [vmem:[#allocation5 + $0x3d8] sm:$0xff]  ;;  %v60_v37 = vld [vmem:[#allocation5 + $0x60] sm:$0xff] }
  0x2a   :  { %217 = vmatprep.subr.mxu0 %v76_v14  ;;  %289 = vmatpush1.msra.mxu1 %v180_v24  ;;  %v169_v38 = vld [vmem:[#allocation5 + $0x3c8] sm:$0xff]  ;;  %v58_v39 = vld [vmem:[#allocation5 + $0x50] sm:$0xff]  ;;  %v168_v40 = vld [vmem:[#allocation5 + $0x3c0] sm:$0xff] }
  0x2b   :  { %218 = vmatpush1.msra.mxu0 %v75_v16  ;;  %290 = vmatprep.subr.mxu1 %v178_v26  ;;  %v57_v41 = vld [vmem:[#allocation5 + $0x48] sm:$0xff]  ;;  %v166_v42 = vld [vmem:[#allocation5 + $0x3b0] sm:$0xff]  ;;  %v55_v43 = vld [vmem:[#allocation5 + $0x38] sm:$0xff] }
  0x2c   :  { %219 = vmatprep.subr.mxu0 %v73_v19  ;;  %291 = vmatpush1.msra.mxu1 %v177_v28  ;;  %v165_v44 = vld [vmem:[#allocation5 + $0x3a8] sm:$0xff]  ;;  %v54_v45 = vld [vmem:[#allocation5 + $0x30] sm:$0xff]  ;;  %v163_v46 = vld [vmem:[#allocation5 + $0x398] sm:$0xff] }
  0x2d   :  { %220 = vmatpush1.msra.mxu0 %v72_v21  ;;  %292 = vmatprep.subr.mxu1 %v175_v30  ;;  %v52_v47 = vld [vmem:[#allocation5 + $0x20] sm:$0xff]  ;;  %v162_v48 = vld [vmem:[#allocation5 + $0x390] sm:$0xff]  ;;  %v51_v49 = vld [vmem:[#allocation5 + $0x18] sm:$0xff] }
  0x2e   :  { %221 = vmatprep.subr.mxu0 %v70_v23  ;;  %293 = vmatpush1.msra.mxu1 %v174_v32  ;;  %v160_v50 = vld [vmem:[#allocation5 + $0x380] sm:$0xff]  ;;  %v49_v51 = vld [vmem:[#allocation5 + $0x8] sm:$0xff]  ;;  %v159_v52 = vld [vmem:[#allocation5 + $0x378] sm:$0xff] }
  0x2f   :  { %222 = vmatpush1.msra.mxu0 %v69_v25  ;;  %294 = vmatprep.subr.mxu1 %v172_v34  ;;  %v48_v53 = vld [vmem:[#allocation5] sm:$0xff]  ;;  %v157_v54 = vld [vmem:[#allocation5 + $0x368] sm:$0xff]  ;;  %v142_v55 = vld [vmem:[#allocation5 + $0x2f0] sm:$0xff] }
  0x30   :  { %223 = vmatprep.subr.mxu0 %v67_v27  ;;  %295 = vmatpush1.msra.mxu1 %v171_v36  ;;  %v156_v56 = vld [vmem:[#allocation5 + $0x360] sm:$0xff]  ;;  %v141_v57 = vld [vmem:[#allocation5 + $0x2e8] sm:$0xff]  ;;  %v154_v58 = vld [vmem:[#allocation5 + $0x350] sm:$0xff] }
  0x31   :  { %224 = vmatpush1.msra.mxu0 %v66_v29  ;;  %296 = vmatprep.subr.mxu1 %v169_v38  ;;  %v139_v59 = vld [vmem:[#allocation5 + $0x2d8] sm:$0xff]  ;;  %v153_v60 = vld [vmem:[#allocation5 + $0x348] sm:$0xff]  ;;  %v138_v61 = vld [vmem:[#allocation5 + $0x2d0] sm:$0xff] }
  0x32   :  { %225 = vmatprep.subr.mxu0 %v64_v31  ;;  %297 = vmatpush1.msra.mxu1 %v168_v40  ;;  %v151_v62 = vld [vmem:[#allocation5 + $0x338] sm:$0xff]  ;;  %v136_v63 = vld [vmem:[#allocation5 + $0x2c0] sm:$0xff]  ;;  %v150_v0 = vld [vmem:[#allocation5 + $0x330] sm:$0xff] }
  0x33   :  { %226 = vmatpush1.msra.mxu0 %v63_v33  ;;  %298 = vmatprep.subr.mxu1 %v166_v42  ;;  %v135_v1 = vld [vmem:[#allocation5 + $0x2b8] sm:$0xff]  ;;  %v148_v2 = vld [vmem:[#allocation5 + $0x320] sm:$0xff]  ;;  %v133_v3 = vld [vmem:[#allocation5 + $0x2a8] sm:$0xff] }
  0x34   :  { %227 = vmatprep.subr.mxu0 %v61_v35  ;;  %299 = vmatpush1.msra.mxu1 %v165_v44  ;;  %v147_v4 = vld [vmem:[#allocation5 + $0x318] sm:$0xff]  ;;  %v132_v5 = vld [vmem:[#allocation5 + $0x2a0] sm:$0xff]  ;;  %v145_v6 = vld [vmem:[#allocation5 + $0x308] sm:$0xff] }
  0x35   :  { %228 = vmatpush1.msra.mxu0 %v60_v37  ;;  %300 = vmatprep.subr.mxu1 %v163_v46  ;;  %v130_v7 = vld [vmem:[#allocation5 + $0x290] sm:$0xff]  ;;  %v144_v8 = vld [vmem:[#allocation5 + $0x300] sm:$0xff]  ;;  %v129_v9 = vld [vmem:[#allocation5 + $0x288] sm:$0xff] }
  0x36   :  { %229 = vmatprep.subr.mxu0 %v58_v39  ;;  %301 = vmatpush1.msra.mxu1 %v162_v48  ;;  %v196_v10 = vld [vmem:[#allocation5 + $0x4a0] sm:$0xff]  ;;  %v127_v11 = vld [vmem:[#allocation5 + $0x278] sm:$0xff]  ;;  %v126_v13 = vld [vmem:[#allocation5 + $0x270] sm:$0xff] }
  0x37   :  { %230 = vmatpush1.msra.mxu0 %v57_v41  ;;  %302 = vmatprep.subr.mxu1 %v160_v50  ;;  %v195_v12 = vld [vmem:[#allocation5 + $0x498] sm:$0xff]  ;;  %v193_v14 = vld [vmem:[#allocation5 + $0x488] sm:$0xff]  ;;  %v124_v15 = vld [vmem:[#allocation5 + $0x260] sm:$0xff] }
  0x38   :  { %231 = vmatprep.subr.mxu0 %v55_v43  ;;  %303 = vmatpush1.msra.mxu1 %v159_v52  ;;  %v192_v16 = vld [vmem:[#allocation5 + $0x480] sm:$0xff]  ;;  %v123_v17 = vld [vmem:[#allocation5 + $0x258] sm:$0xff]  ;;  %v121_v19 = vld [vmem:[#allocation5 + $0x248] sm:$0xff] }
  0x39   :  { %232 = vmatpush1.msra.mxu0 %v54_v45  ;;  %304 = vmatprep.subr.mxu1 %v157_v54  ;;  %v1036_v18 = vld [vmem:[#allocation2 + $0x18] sm:$0xff]  ;;  %v1038_v20 = vld [vmem:[#allocation2 + $0x10] sm:$0xff]  ;;  %v120_v21 = vld [vmem:[#allocation5 + $0x240] sm:$0xff] }
  0x3a   :  { %233 = vmatprep.subr.mxu0 %v52_v47  ;;  %305 = vmatpush1.msra.mxu1 %v156_v56  ;;  %v1040_v22 = vld [vmem:[#allocation2 + $0x8] sm:$0xff]  ;;  %v118_v23 = vld [vmem:[#allocation5 + $0x230] sm:$0xff]  ;;  %v1044_v24 = vld [vmem:[#allocation2 + $0x38] sm:$0xff] }
  0x3b   :  { %234 = vmatpush1.msra.mxu0 %v51_v49  ;;  %306 = vmatprep.subr.mxu1 %v154_v58  ;;  %v117_v25 = vld [vmem:[#allocation5 + $0x228] sm:$0xff]  ;;  %v143_v26 = vld [vmem:[#allocation5 + $0x2f8] sm:$0xff]  ;;  %v1048_v28 = vld [vmem:[#allocation2 + $0x30] sm:$0xff] }
  0x3c   :  { %235 = vmatprep.subr.mxu0 %v49_v51  ;;  %307 = vmatpush1.msra.mxu1 %v153_v60  ;;  %v115_v27 = vld [vmem:[#allocation5 + $0x218] sm:$0xff]  ;;  %v114_v29 = vld [vmem:[#allocation5 + $0x210] sm:$0xff]  ;;  %v112_v31 = vld [vmem:[#allocation5 + $0x200] sm:$0xff] }
  0x3d   :  { %236 = vmatpush1.msra.mxu0 %v48_v53  ;;  %308 = vmatprep.subr.mxu1 %v151_v62  ;;  %v95_v30 = vld [vmem:[#allocation5 + $0x178] sm:$0xff]  ;;  %v140_v32 = vld [vmem:[#allocation5 + $0x2e0] sm:$0xff]  ;;  %v109_v35 = vld [vmem:[#allocation5 + $0x1e8] sm:$0xff] }
  0x3e   :  { %237 = vmatprep.subr.mxu0 %v142_v55  ;;  %309 = vmatpush1.msra.mxu1 %v150_v0  ;;  %v111_v33 = vld [vmem:[#allocation5 + $0x1f8] sm:$0xff]  ;;  %v92_v34 = vld [vmem:[#allocation5 + $0x160] sm:$0xff]  ;;  %v137_v36 = vld [vmem:[#allocation5 + $0x2c8] sm:$0xff] }
  0x3f   :  { %238 = vmatpush2.msra.mxu0 %v141_v57  ;;  %310 = vmatprep.subr.mxu1 %v148_v2  ;;  %v108_v37 = vld [vmem:[#allocation5 + $0x1e0] sm:$0xff]  ;;  %v89_v38 = vld [vmem:[#allocation5 + $0x148] sm:$0xff]  ;;  %v106_v39 = vld [vmem:[#allocation5 + $0x1d0] sm:$0xff] }
  0x40   :  { %239 = vmatprep.subr.mxu0 %v139_v59  ;;  %311 = vmatpush1.msra.mxu1 %v147_v4  ;;  %v134_v40 = vld [vmem:[#allocation5 + $0x2b0] sm:$0xff]  ;;  %v105_v41 = vld [vmem:[#allocation5 + $0x1c8] sm:$0xff]  ;;  %v103_v43 = vld [vmem:[#allocation5 + $0x1b8] sm:$0xff]  ;;  %v1010_v59 = vmov 0.0  }
  0x41   :  { %240 = vmatpush2.msra.mxu0 %v138_v61  ;;  %312 = vmatprep.subr.mxu1 %v145_v6  ;;  %v86_v42 = vld [vmem:[#allocation5 + $0x130] sm:$0xff]  ;;  %v131_v44 = vld [vmem:[#allocation5 + $0x298] sm:$0xff]  ;;  %v100_v47 = vld [vmem:[#allocation5 + $0x1a0] sm:$0xff] }
  0x42   :  { %241 = vmatprep.subr.mxu0 %v136_v63  ;;  %313 = vmatpush1.msra.mxu1 %v144_v8  ;;  %v102_v45 = vld [vmem:[#allocation5 + $0x1b0] sm:$0xff]  ;;  %v83_v46 = vld [vmem:[#allocation5 + $0x118] sm:$0xff]  ;;  %v128_v48 = vld [vmem:[#allocation5 + $0x280] sm:$0xff] }
  0x43   :  { %242 = vmatpush2.msra.mxu0 %v135_v1  ;;  %342 = vmatprep.subr.mxu1 %v196_v10  ;;  %v99_v49 = vld [vmem:[#allocation5 + $0x198] sm:$0xff]  ;;  %v80_v50 = vld [vmem:[#allocation5 + $0x100] sm:$0xff]  ;;  %v97_v51 = vld [vmem:[#allocation5 + $0x188] sm:$0xff] }
  0x44   :  { %243 = vmatprep.subr.mxu0 %v133_v3  ;;  %343 = vmatpush2.msra.mxu1 %v195_v12  ;;  %v125_v52 = vld [vmem:[#allocation5 + $0x268] sm:$0xff]  ;;  %v96_v53 = vld [vmem:[#allocation5 + $0x180] sm:$0xff]  ;;  %v191_v57 = vld [vmem:[#allocation5 + $0x478] sm:$0xff] }
  0x45   :  { %244 = vmatpush2.msra.mxu0 %v132_v5  ;;  %344 = vmatprep.subr.mxu1 %v193_v14  ;;  %v77_v54 = vld [vmem:[#allocation5 + $0xe8] sm:$0xff]  ;;  %v1053_v55 = vld [vmem:[#allocation2] sm:$0xff]  ;;  %v122_v58 = vld [vmem:[#allocation5 + $0x250] sm:$0xff] }
  0x46   :  { %245 = vmatprep.subr.mxu0 %v130_v7  ;;  %345 = vmatpush2.msra.mxu1 %v192_v16  ;;  %v1055_v56 = vld [vmem:[#allocation2 + $0x28] sm:$0xff]  ;;  %v188_v60 = vld [vmem:[#allocation5 + $0x460] sm:$0xff]  ;;  %v74_v61 = vld [vmem:[#allocation5 + $0xd0] sm:$0xff] }
  0x47   :  { %246 = vmatpush2.msra.mxu0 %v129_v9  ;;  %847 = vmatprep.mubr.msk.f32.mxu1 %vm198_vm0, %v1036_v18  ;;  %v1060_v62 = vld [vmem:[#allocation2 + $0x20] sm:$0xff]  ;;  %v185_v63 = vld [vmem:[#allocation5 + $0x448] sm:$0xff]  ;;  %v119_v0 = vld [vmem:[#allocation5 + $0x238] sm:$0xff] }
  0x48   :  { %247 = vmatprep.subr.mxu0 %v127_v11  ;;  %347 = vmatmul.mubr.f32.vlgmr.msra.gmra.mxu1 %v1038_v20  ;;  %v71_v1 = vld [vmem:[#allocation5 + $0xb8] sm:$0xff]  ;;  %v182_v2 = vld [vmem:[#allocation5 + $0x430] sm:$0xff]  ;;  %v116_v3 = vld [vmem:[#allocation5 + $0x220] sm:$0xff] }
  0x49   :  { %248 = vmatpush2.msra.mxu0 %v126_v13  ;;  %269 = vmatprep.mubr.f32.mxu0 %v1040_v22  ;;  %v68_v4 = vld [vmem:[#allocation5 + $0xa0] sm:$0xff]  ;;  %v179_v5 = vld [vmem:[#allocation5 + $0x418] sm:$0xff]  ;;  %v113_v6 = vld [vmem:[#allocation5 + $0x208] sm:$0xff] }
  0x4a   :  { %249 = vmatprep.subr.mxu0 %v124_v15  ;;  %848 = vmatprep.mubr.msk.f32.mxu1 %vm198_vm0, %v1044_v24  ;;  %v65_v7 = vld [vmem:[#allocation5 + $0x88] sm:$0xff]  ;;  %v176_v8 = vld [vmem:[#allocation5 + $0x400] sm:$0xff]  ;;  %v110_v9 = vld [vmem:[#allocation5 + $0x1f0] sm:$0xff] }
  0x4b   :  { %250 = vmatpush2.msra.mxu0 %v123_v17  ;;  %853 = vmatprep.subr.mxu1 %v143_v26  ;;  %v62_v10 = vld [vmem:[#allocation5 + $0x70] sm:$0xff]  ;;  %v173_v11 = vld [vmem:[#allocation5 + $0x3e8] sm:$0xff]  ;;  %v107_v12 = vld [vmem:[#allocation5 + $0x1d8] sm:$0xff] }
  0x4c   :  { %251 = vmatprep.subr.mxu0 %v121_v19  ;;  %353 = vmatmul.mubr.f32.gmra.mxu1 %v1048_v28  ;;  %v59_v13 = vld [vmem:[#allocation5 + $0x58] sm:$0xff]  ;;  %v170_v14 = vld [vmem:[#allocation5 + $0x3d0] sm:$0xff]  ;;  %v104_v15 = vld [vmem:[#allocation5 + $0x1c0] sm:$0xff] }
  0x4d   :  { %252 = vmatpush2.msra.mxu0 %v120_v21  ;;  %854 = vmatpush3.msra.mxu1 %v95_v30  ;;  %v56_v16 = vld [vmem:[#allocation5 + $0x40] sm:$0xff]  ;;  %v167_v17 = vld [vmem:[#allocation5 + $0x3b8] sm:$0xff]  ;;  %v101_v19 = vld [vmem:[#allocation5 + $0x1a8] sm:$0xff] }
  0x4e   :  { %253 = vmatprep.subr.mxu0 %v118_v23  ;;  %855 = vmatprep.subr.mxu1 %v140_v32  ;;  %v53_v21 = vld [vmem:[#allocation5 + $0x28] sm:$0xff]  ;;  %v164_v23 = vld [vmem:[#allocation5 + $0x3a0] sm:$0xff]  ;;  %v158_v26 = vld [vmem:[#allocation5 + $0x370] sm:$0xff] }
  0x4f   :  { %254 = vmatpush2.msra.mxu0 %v117_v25  ;;  %856 = vmatpush3.msra.mxu1 %v92_v34  ;;  %v161_v25 = vld [vmem:[#allocation5 + $0x388] sm:$0xff]  ;;  %v152_v30 = vld [vmem:[#allocation5 + $0x340] sm:$0xff] }
  0x50   :  { %255 = vmatprep.subr.mxu0 %v115_v27  ;;  %857 = vmatprep.subr.mxu1 %v137_v36  ;;  %v155_v27 = vld [vmem:[#allocation5 + $0x358] sm:$0xff]  ;;  %v197_v32 = vld [vmem:[#allocation5 + $0x4a8] sm:$0xff] }
  0x51   :  { %256 = vmatpush2.msra.mxu0 %v114_v29  ;;  %858 = vmatpush3.msra.mxu1 %v89_v38  ;;  %v98_v29 = vld [vmem:[#allocation5 + $0x190] sm:$0xff] }
  0x52   :  { %257 = vmatprep.subr.mxu0 %v112_v31  ;;  %859 = vmatprep.subr.mxu1 %v134_v40  ;;  %v50_v31 = vld [vmem:[#allocation5 + $0x10] sm:$0xff] }
  0x53   :  { %258 = vmatpush2.msra.mxu0 %v111_v33  ;;  %860 = vmatpush3.msra.mxu1 %v86_v42  ;;  %v194_v33 = vld [vmem:[#allocation5 + $0x490] sm:$0xff] }
  0x54   :  { %259 = vmatprep.subr.mxu0 %v109_v35  ;;  %861 = vmatprep.subr.mxu1 %v131_v44 }
  0x55   :  { %260 = vmatpush2.msra.mxu0 %v108_v37  ;;  %862 = vmatpush3.msra.mxu1 %v83_v46 }
  0x56   :  { %261 = vmatprep.subr.mxu0 %v106_v39  ;;  %863 = vmatprep.subr.mxu1 %v128_v48 }
  0x57   :  { %262 = vmatpush2.msra.mxu0 %v105_v41  ;;  %864 = vmatpush3.msra.mxu1 %v80_v50 }
  0x58   :  { %263 = vmatprep.subr.mxu0 %v103_v43  ;;  %865 = vmatprep.subr.mxu1 %v125_v52 }
  0x59   :  { %264 = vmatpush2.msra.mxu0 %v102_v45  ;;  %866 = vmatpush3.msra.mxu1 %v77_v54 }
  0x5a   :  { %265 = vmatprep.subr.mxu0 %v100_v47  ;;  %867 = vmatprep.subr.mxu1 %v122_v58 }
  0x5b   :  { %266 = vmatpush2.msra.mxu0 %v99_v49  ;;  %868 = vmatpush3.msra.mxu1 %v74_v61 }
  0x5c   :  { %267 = vmatprep.subr.mxu0 %v97_v51  ;;  %869 = vmatprep.subr.mxu1 %v119_v0 }
  0x5d   :  { %268 = vmatpush2.msra.mxu0 %v96_v53  ;;  %870 = vmatpush3.msra.mxu1 %v71_v1 }
  0x5e   :  { %270 = vmatmul.mubr.f32.vlgmr.msra.gmra.mxu0 %v1053_v55  ;;  %434 = vmatprep.subr.mxu0 %v1010_v59 }
  0x5f   :  { %275 = vmatprep.mubr.f32.mxu0 %v1055_v56  ;;  %435 = vmatpush1.msra.mxu0 %v191_v57 }
  0x60   :  { %436 = vmatprep.subr.mxu0 %v1010_v59  ;;  %871 = vmatprep.subr.mxu1 %v116_v3 }
  0x61   :  { %437 = vmatpush1.msra.mxu0 %v188_v60  ;;  %872 = vmatpush3.msra.mxu1 %v68_v4 }
  0x62   :  { %276 = vmatmul.mubr.f32.gmra.mxu0 %v1060_v62  ;;  %438 = vmatprep.subr.mxu0 %v1010_v59 }
  0x63   :  { %439 = vmatpush1.msra.mxu0 %v185_v63  ;;  %873 = vmatprep.subr.mxu1 %v113_v6 }
  0x64   :  { %440 = vmatprep.subr.mxu0 %v1010_v59  ;;  %874 = vmatpush3.msra.mxu1 %v65_v7 }
  0x65   :  { %441 = vmatpush1.msra.mxu0 %v182_v2  ;;  %875 = vmatprep.subr.mxu1 %v110_v9 }
  0x66   :  { %442 = vmatprep.subr.mxu0 %v1010_v59  ;;  %876 = vmatpush3.msra.mxu1 %v62_v10 }
  0x67   :  { %443 = vmatpush1.msra.mxu0 %v179_v5  ;;  %877 = vmatprep.subr.mxu1 %v107_v12 }
  0x68   :  { %444 = vmatprep.subr.mxu0 %v1010_v59  ;;  %878 = vmatpush3.msra.mxu1 %v59_v13 }
  0x69   :  { %445 = vmatpush1.msra.mxu0 %v176_v8  ;;  %879 = vmatprep.subr.mxu1 %v104_v15 }
  0x6a   :  { %446 = vmatprep.subr.mxu0 %v1010_v59  ;;  %880 = vmatpush3.msra.mxu1 %v56_v16 }
  0x6b   :  { %447 = vmatpush1.msra.mxu0 %v173_v11  ;;  %881 = vmatprep.subr.mxu1 %v101_v19 }
  0x6c   :  { %448 = vmatprep.subr.mxu0 %v1010_v59  ;;  %882 = vmatpush3.msra.mxu1 %v53_v21 }
  0x6d   :  { %449 = vmatpush1.msra.mxu0 %v170_v14  ;;  %423 = vmatprep.mubr.f32.mxu1 %v1040_v22  ;;  %v146_v22 = vld [vmem:[#allocation5 + $0x310] sm:$0xff] }
  0x6e   :  { %450 = vmatprep.subr.mxu0 %v1010_v59  ;;  %849 = vmatprep.mubr.msk.f32.mxu0 %vm198_vm0, %v1036_v18  ;;  %v149_v18 = vld [vmem:[#allocation5 + $0x328] sm:$0xff] }
  0x6f   :  { %451 = vmatpush1.msra.mxu0 %v167_v17  ;;  %883 = vmatprep.subr.mxu1 %v98_v29 }
  0x70   :  { %452 = vmatprep.subr.mxu0 %v1010_v59  ;;  %884 = vmatpush3.msra.mxu1 %v50_v31 }
  0x71   :  { %453 = vmatpush1.msra.mxu0 %v164_v23  ;;  %424 = vmatmul.mubr.f32.vlgmr.msra.gmra.mxu1 %v1053_v55  ;;  %v649_v55 = vlaneseq }
  0x72   :  { %454 = vmatprep.subr.mxu0 %v1010_v59  ;;  %899 = vmatprep.subr.mxu1 %v1010_v59 }
  0x73   :  { %455 = vmatpush1.msra.mxu0 %v161_v25  ;;  %428 = vmatprep.mubr.f32.mxu1 %v1055_v56  ;;  %v650_v56 = vshrl.u32 %v649_v55, 7  ;;  %v652_v57 = vand.u32 127, %v649_v55 }
  0x74   :  { %456 = vmatprep.subr.mxu0 %v1010_v59 }
  0x75   :  { %457 = vmatpush1.msra.mxu0 %v158_v26  ;;  %429 = vmatmul.mubr.f32.gmra.mxu1 %v1060_v62  ;;  %vm653_vm2 = vcmp.le.s32.totalorder %v652_v57, %v650_v56 }
  0x76   :  { %458 = vmatprep.subr.mxu0 %v1010_v59  ;;  %901 = vmatprep.mubr.msk.f32.mxu1 %vm1011_vm1, %v1010_v59 }
  0x77   :  { %459 = vmatpush1.msra.mxu0 %v155_v27 }
  0x78   :  { %460 = vmatprep.subr.mxu0 %v1010_v59 }
  0x79   :  { %461 = vmatpush1.msra.mxu0 %v152_v30 }
  0x7a   :  { %462 = vmatprep.subr.mxu0 %v1010_v59 }
  0x7b   :  { %463 = vmatpush1.msra.mxu0 %v149_v18 }
  0x7c   :  { %464 = vmatprep.subr.mxu0 %v1010_v59 }
  0x7d   :  { %465 = vmatpush1.msra.mxu0 %v146_v22 }
  0x7e   :  { %494 = vmatprep.subr.mxu0 %v1010_v59 }
  0x7f   :  { %495 = vmatpush2.msra.mxu0 %v197_v32 }
  0x80   :  { %496 = vmatprep.subr.mxu0 %v1010_v59 }
  0x81   :  { %497 = vmatpush2.msra.mxu0 %v194_v33 }
  0x82   :  { %499 = vmatmul.mubr.f32.vlgmr.msra.gmra.mxu0 %v1038_v20 }
  0x83   :  { %850 = vmatprep.mubr.msk.f32.mxu0 %vm198_vm0, %v1044_v24 }
  0x86   :  { %504 = vmatmul.mubr.f32.gmra.mxu0 %v1048_v28 }
 0x108   :  { %v348_v34 = vpop.f32.mrf.mxu1 }
 0x10a   :  { %v350_v35 = vpop.f32.mrf.mxu1 }
 0x10c   :  { %v354_v38 = vpop.f32.mrf.mxu1 }
 0x10e   :  { %v356_v20 = vpop.f32.mrf.mxu1 }
 0x11e   :  { %v271_v36 = vpop.f32.mrf.mxu0 }
 0x11f   :  { %v349_v41 = vadd.f32 %v348_v34, %v271_v36 }
 0x120   :  { %v273_v37 = vpop.f32.mrf.mxu0 }
 0x121   :  { %v351_v39 = vadd.f32 %v350_v35, %v273_v37 }
 0x122   :  { %v277_v40 = vpop.f32.mrf.mxu0 }
 0x123   :  { %900 = vmatpush3.xpose.msra.mxu1 %v351_v39  ;;  %v355_v28 = vadd.f32 %v354_v38, %v277_v40 }
 0x124   :  { %v279_v42 = vpop.f32.mrf.mxu0  ;;  %904 = vmatprep.subr.mxu1 %v1010_v59 }
 0x125   :  { %v357_v24 = vadd.f32 %v356_v20, %v279_v42 }
 0x126   :  { %902 = vmatmul.mubr.f32.vlgmr.msra.gmra.mxu1 %v349_v41 }
 0x127   :  { %905 = vmatpush3.xpose.msra.mxu1 %v357_v24  ;;  %906 = vmatprep.mubr.msk.f32.mxu1 %vm1011_vm1, %v1010_v59 }
 0x128   :  { %909 = vmatprep.subr.mxu1 %v1010_v59 }
 0x12a   :  { %907 = vmatmul.mubr.f32.vlgmr.msra.gmra.mxu1 %v355_v28 }
 0x12b   :  { %911 = vmatprep.mubr.msk.f32.mxu1 %vm1011_vm1, %v1010_v59 }
 0x131   :  { %v885_v43 = vpop.f32.mrf.mxu1 }
 0x133   :  { %v886_v44 = vpop.f32.mrf.mxu1 }
 0x134   :  { %v887_v46 = vadd.f32 %v886_v44, %v885_v43 }
 0x135   :  { %v888_v45 = vpop.f32.mrf.mxu1 }
 0x137   :  { %v889_v47 = vpop.f32.mrf.mxu1 }
 0x138   :  { %v890_v49 = vadd.f32 %v889_v47, %v888_v45 }
 0x142   :  { %v500_v48 = vpop.f32.mrf.mxu0 }
 0x143   :  { %v501_v50 = vadd.f32 %v887_v46, %v500_v48 }
 0x144   :  { %v502_v51 = vpop.f32.mrf.mxu0 }
 0x145   :  { %910 = vmatpush3.msra.mxu1 %v501_v50 }
 0x146   :  { %v505_v52 = vpop.f32.mrf.mxu0  ;;  %914 = vmatprep.subr.mxu1 %v1010_v59 }
 0x147   :  { %v506_v53 = vadd.f32 %v890_v49, %v505_v52 }
 0x148   :  { %v507_v54 = vpop.f32.mrf.mxu0 }
 0x1e6   :  { %v575_v58 = vpop.f32.mrf.mxu1 }
 0x1e7   :  { %v656_v60 = vsel %vm653_vm2, %v575_v58, -1e+30 }
 0x1e8   :  { %v903_v61 = vpop.f32.mrf.mxu1  ;;  %v659_v62 = vsel %vm658_vm3, %v656_v60, -inf }
 0x1e9   :  { %660 = vmax.xlane.f32.xlu0 %v659_v62 }
 0x1ea   :  { %v645_v63 = vpop.f32.mrf.mxu1 }
 0x1eb   :  { %v657_v0 = vsel %vm653_vm2, %v645_v63, -1e+30 }
 0x1ec   :  { %v908_v1 = vpop.f32.mrf.mxu1  ;;  %v662_v2 = vsel %vm658_vm3, %v657_v0, -inf }
 0x1ed   :  { %663 = vmax.xlane.f32.xlu0 %v662_v2 }
 0x272   :  { %v661_v3 = vpop.xlane.xlu0 %660 }
 0x273   :  { %v665_v4 = vsub.f32 %v656_v60, %v661_v3 }
 0x275   :  { %v667_v5 = vmul.f32 1.442695, %v665_v4 }
 0x276   :  { %v664_v6 = vpop.xlane.xlu0 %663 }
 0x277   :  { %930 = vpow2.f32 %v667_v5  ;;  %v666_v7 = vsub.f32 %v657_v0, %v664_v6 }
 0x279   :  { %v669_v8 = vmul.f32 1.442695, %v666_v7 }
 0x27b   :  { %932 = vpow2.f32 %v669_v8 }
 0x284   :  { %v931_v9 = vpop.eup %930 }
 0x285   :  { %v671_v10 = vsel %vm658_vm3, %v931_v9, 0.0 }
 0x286   :  { %672 = vadd.xlane.f32.xlu1 %v671_v10 }
 0x288   :  { %v933_v11 = vpop.eup %932 }
 0x289   :  { %v674_v12 = vsel %vm658_vm3, %v933_v11, 0.0 }
 0x28a   :  { %675 = vadd.xlane.f32.xlu1 %v674_v12 }
 0x30f   :  { %v673_v13 = vpop.xlane.xlu1 %672 }
 0x310   :  { %934 = vrcp.f32 %v673_v13 }
 0x313   :  { %v676_v14 = vpop.xlane.xlu1 %675 }
 0x314   :  { %936 = vrcp.f32 %v676_v14 }
 0x31d   :  { %v935_v15 = vpop.eup %934 }
 0x31e   :  { %v679_v16 = vmul.f32 %v935_v15, %v931_v9 }
 0x320   :  { %912 = vmatmul.mubr.msk.f32.vlgmr.msra.gmra.mxu1 %vm658_vm3, %v679_v16 }
 0x321   :  { %v937_v17 = vpop.eup %936  ;;  %915 = vmatpush3.msra.mxu1 %v506_v53  ;;  %916 = vmatprep.mubr.msk.f32.mxu1 %vm1011_vm1, %v1010_v59 }
 0x322   :  { %v680_v19 = vmul.f32 %v937_v17, %v933_v11 }
 0x324   :  { %917 = vmatmul.mubr.msk.f32.vlgmr.msra.gmra.mxu1 %vm658_vm3, %v680_v19 }
 0x3e0   :  { %v750_v21 = vpop.f32.mrf.mxu1 }
 0x3e1   :  { %827 = vst [vmem:[#allocation7] sm:$0xff] %v750_v21 }
 0x3e2   :  { %v913_v23 = vpop.f32.mrf.mxu1 }
 0x3e4   :  { %v823_v25 = vpop.f32.mrf.mxu1 }
 0x3e5   :  { %828 = vst [vmem:[#allocation7 + $0x8] sm:$0xff] %v823_v25 }
 0x3e6   :  { %v918_v26 = vpop.f32.mrf.mxu1 }
 0x3e7   :  { %989 = shalt.err (!%p986_p0)
}
 0x3e8   :  { %s1013_s24 = smov 128   ;;  %s1014_s25 = smov 8  }
 0x3e9   :  { %840 = dma.vmem_to_hbm [thread:$0]  %s835_s1, 256, %s1113_s2, [#allocation4], %s1013_s24, %s1013_s24, %s1014_s25  }
 0x3ea   :  { %1002 = dma.done.wait [#allocation4], 256  }
 0x3eb   :  { %1003 = vsyncadd [#allocation4], 4294967040 }
 0x3ec   :  { %844 = vsyncpa [#allocation3], 1 }
 0x3ed   :  { %845 = vsyncpa [#allocation6], 1 }
 0x3ee   :  { %846 = vsyncpa [#allocation4], 1 }

</bundles_post_ra>
